<compile_context>
chip_gen: v7x
topology: tpu7x:2x2x1
jax: 0.10.0
libtpu: 0.0.40
codegen_flags: <defaults>
</compile_context>

<pallas_src>
import functools

import jax
import jax.numpy as jnp
from jax.experimental import pallas as pl
from jax.experimental.pallas import tpu as pltpu


def _round_up(x: int, m: int) -> int:
    return ((x + m - 1) // m) * m


def _ngram_kernel(x_ref, w1_ref, b1_ref, w2_ref, b2_ref, out_ref, *, v_true):
    # x is bf16; both matmuls use bf16 MXU operands with f32 accumulation.
    x = x_ref[...]                                                  # (Bt, Kp) bf16
    h = jnp.dot(x, w1_ref[...], preferred_element_type=jnp.float32)  # (Bt, Hp) f32
    h = jnp.maximum(h + b1_ref[...], 0.0)                           # f32 epilogue
    logits = jnp.dot(h.astype(jnp.bfloat16), w2_ref[...],
                     preferred_element_type=jnp.float32)            # (Bt, Vp) f32
    logits = logits + b2_ref[...]

    # Mask the padded vocab lanes so the row-wise reduction is exact.
    lane = jax.lax.broadcasted_iota(jnp.int32, logits.shape, 1)
    logits = jnp.where(lane < v_true, logits, jnp.float32(-1e30))

    # Numerically stable log_softmax over the (padded) vocab lanes.
    m = jnp.max(logits, axis=-1, keepdims=True)
    shifted = logits - m
    lse = jnp.log(jnp.sum(jnp.exp(shifted), axis=-1, keepdims=True))
    out_ref[...] = shifted - lse


def ngram_lm_forward(inputs, emb_table, w1, b1, w2, b2, *, block_b=128):
    """inputs: int32 (B, W) token ids.  Returns (B, V) f32 log-probs."""
    B, W = inputs.shape
    V, E = emb_table.shape
    K = W * E
    H = w1.shape[1]
    assert w1.shape == (K, H) and w2.shape == (H, V)

    # Embedding lookup + flatten (indexing glue kept in plain JAX).
    x = jnp.take(emb_table, inputs, axis=0).reshape(B, K)

    # MXU-/lane-friendly padded sizes.
    K_pad = _round_up(K, 128)
    H_pad = _round_up(H, 128)
    V_pad = _round_up(V, 128)
    blk_b = block_b if B >= block_b else _round_up(max(B, 8), 8)
    B_pad = _round_up(B, blk_b)

    f32, bf16 = jnp.float32, jnp.bfloat16
    x_p = jnp.zeros((B_pad, K_pad), bf16).at[:B, :K].set(x.astype(bf16))
    w1_p = jnp.zeros((K_pad, H_pad), bf16).at[:K, :H].set(w1.astype(bf16))
    b1_p = jnp.zeros((1, H_pad), f32).at[0, :H].set(b1.astype(f32))
    w2_p = jnp.zeros((H_pad, V_pad), bf16).at[:H, :V].set(w2.astype(bf16))
    b2_p = jnp.zeros((1, V_pad), f32).at[0, :V].set(b2.astype(f32))

    grid = (B_pad // blk_b,)
    kernel = functools.partial(_ngram_kernel, v_true=V)

    cost = pl.CostEstimate(
        flops=2 * B_pad * (K_pad * H_pad + H_pad * V_pad),
        transcendentals=B_pad * V_pad,
        bytes_accessed=(x_p.size * 2 + w1_p.size * 2 + w2_p.size * 2
                        + b1_p.size * 4 + b2_p.size * 4 + B_pad * V_pad * 4),
    )

    out = pl.pallas_call(
        kernel,
        out_shape=jax.ShapeDtypeStruct((B_pad, V_pad), f32),
        grid_spec=pltpu.PrefetchScalarGridSpec(
            num_scalar_prefetch=0,
            grid=grid,
            in_specs=[
                pl.BlockSpec((blk_b, K_pad), lambda i: (i, 0)),   # x: tiled over B
                pl.BlockSpec((K_pad, H_pad), lambda i: (0, 0)),   # w1: resident
                pl.BlockSpec((1, H_pad), lambda i: (0, 0)),       # b1
                pl.BlockSpec((H_pad, V_pad), lambda i: (0, 0)),   # w2: resident
                pl.BlockSpec((1, V_pad), lambda i: (0, 0)),       # b2
            ],
            out_specs=pl.BlockSpec((blk_b, V_pad), lambda i: (i, 0)),
        ),
        compiler_params=pltpu.CompilerParams(
            dimension_semantics=("parallel",),
        ),
        cost_estimate=cost,
    )(x_p, w1_p, b1_p, w2_p, b2_p)

    return out[:B, :V]


if __name__ == "__main__":
    # Small, deterministic configuration consistent with NGramLM.__init__.
    vocab_size = 64
    embedding_dim = 16
    hidden_size = 32
    window_size = 8
    batch = 2

    key = jax.random.PRNGKey(0)
    k_emb, k_w1, k_b1, k_w2, k_b2, k_in = jax.random.split(key, 6)

    emb_table = jax.random.normal(k_emb, (vocab_size, embedding_dim), jnp.float32) * 0.1
    # Linear weights stored as (in_features, out_features) = torch weight.T
    w1 = jax.random.normal(k_w1, (embedding_dim * window_size, hidden_size), jnp.float32) * 0.1
    b1 = jax.random.normal(k_b1, (hidden_size,), jnp.float32) * 0.1
    w2 = jax.random.normal(k_w2, (hidden_size, vocab_size), jnp.float32) * 0.1
    b2 = jax.random.normal(k_b2, (vocab_size,), jnp.float32) * 0.1

    inputs = jax.random.randint(k_in, (batch, window_size), 0, vocab_size, jnp.int32)

    log_probs = jax.block_until_ready(
        ngram_lm_forward(inputs, emb_table, w1, b1, w2, b2))

    # Pure-JAX f32 reference of the same forward pass.
    x_ref = jnp.take(emb_table, inputs, axis=0).reshape(batch, -1)
    h_ref = jnp.maximum(x_ref @ w1 + b1, 0.0)
    logits_ref = h_ref @ w2 + b2
    ref = jax.nn.log_softmax(logits_ref, axis=1)

    assert log_probs.shape == (batch, vocab_size)
    # bf16 MXU operands -> relaxed tolerance vs the f32 reference.
    assert bool(jnp.allclose(log_probs, ref, atol=3e-2, rtol=3e-2)), (
        float(jnp.max(jnp.abs(log_probs - ref))))
    # log-probs must exponentiate to a valid distribution over the true vocab.
    assert bool(jnp.allclose(jnp.sum(jnp.exp(log_probs), axis=1), 1.0, atol=1e-3))

    print("KERNEL_OK")
</pallas_src>

<mosaic_0001>
module attributes {stable_mosaic.version = 11 : i64} {
  func.func @_ngram_kernel(%arg0: i32, %arg1: memref<8x128xbf16, #tpu.memory_space<vmem>>, %arg2: memref<128x128xbf16, #tpu.memory_space<vmem>>, %arg3: memref<1x128xf32, #tpu.memory_space<vmem>>, %arg4: memref<128x128xbf16, #tpu.memory_space<vmem>>, %arg5: memref<1x128xf32, #tpu.memory_space<vmem>>, %arg6: memref<8x128xf32, #tpu.memory_space<vmem>>) attributes {dimension_semantics = [#tpu.dimension_semantics<parallel>], iteration_bounds = array<i64: 1>, scalar_prefetch = 0 : i64, scratch_operands = 0 : i64, tpu.core_type = #tpu.core_type<tc>, window_params = [{transform_indices = @transform_0, window_bounds = array<i64: 8, 128>}, {pipeline_mode = #tpu.pipeline_mode<synchronous>, transform_indices = @transform_1, window_bounds = array<i64: 128, 128>}, {pipeline_mode = #tpu.pipeline_mode<synchronous>, transform_indices = @transform_2, window_bounds = array<i64: 1, 128>}, {pipeline_mode = #tpu.pipeline_mode<synchronous>, transform_indices = @transform_3, window_bounds = array<i64: 128, 128>}, {pipeline_mode = #tpu.pipeline_mode<synchronous>, transform_indices = @transform_4, window_bounds = array<i64: 1, 128>}, {transform_indices = @transform_5, window_bounds = array<i64: 8, 128>}]} {
    %c0 = arith.constant 0 : index
    %c0_0 = arith.constant 0 : index
    %0 = vector.load %arg1[%c0, %c0_0] : memref<8x128xbf16, #tpu.memory_space<vmem>>, vector<8x128xbf16>
    %c0_1 = arith.constant 0 : index
    %c0_2 = arith.constant 0 : index
    %1 = vector.load %arg2[%c0_1, %c0_2] : memref<128x128xbf16, #tpu.memory_space<vmem>>, vector<128x128xbf16>
    %cst = arith.constant dense<0.000000e+00> : vector<8x128xf32>
    %2 = tpu.matmul %0, %1, %cst {dimension_numbers = #tpu.dot_dimension_numbers<[1], [0], [0], [1], [0, 0, 1, 1], [], []>} : vector<8x128xbf16>, vector<128x128xbf16>, vector<8x128xf32> -> vector<8x128xf32>
    %c0_3 = arith.constant 0 : index
    %c0_4 = arith.constant 0 : index
    %3 = vector.load %arg3[%c0_3, %c0_4] : memref<1x128xf32, #tpu.memory_space<vmem>>, vector<1x128xf32>
    %4 = vector.broadcast %3 : vector<1x128xf32> to vector<8x128xf32>
    %5 = arith.addf %2, %4 : vector<8x128xf32>
    %cst_5 = arith.constant 0.000000e+00 : f32
    %6 = vector.broadcast %cst_5 : f32 to vector<8x128xf32>
    %7 = arith.maximumf %5, %6 : vector<8x128xf32>
    %8 = arith.truncf %7 : vector<8x128xf32> to vector<8x128xbf16>
    %c0_6 = arith.constant 0 : index
    %c0_7 = arith.constant 0 : index
    %9 = vector.load %arg4[%c0_6, %c0_7] : memref<128x128xbf16, #tpu.memory_space<vmem>>, vector<128x128xbf16>
    %cst_8 = arith.constant dense<0.000000e+00> : vector<8x128xf32>
    %10 = tpu.matmul %8, %9, %cst_8 {dimension_numbers = #tpu.dot_dimension_numbers<[1], [0], [0], [1], [0, 0, 1, 1], [], []>} : vector<8x128xbf16>, vector<128x128xbf16>, vector<8x128xf32> -> vector<8x128xf32>
    %c0_9 = arith.constant 0 : index
    %c0_10 = arith.constant 0 : index
    %11 = vector.load %arg5[%c0_9, %c0_10] : memref<1x128xf32, #tpu.memory_space<vmem>>, vector<1x128xf32>
    %12 = vector.broadcast %11 : vector<1x128xf32> to vector<8x128xf32>
    %13 = arith.addf %10, %12 : vector<8x128xf32>
    %14 = tpu.iota {dimensions = array<i32: 1>} : vector<8x128xi32>
    %c64_i32 = arith.constant 64 : i32
    %15 = vector.broadcast %c64_i32 : i32 to vector<8x128xi32>
    %16 = arith.cmpi slt, %14, %15 : vector<8x128xi32>
    %cst_11 = arith.constant -1.000000e+30 : f32
    %17 = vector.broadcast %cst_11 : f32 to vector<8x128xf32>
    %18 = arith.select %16, %13, %17 : vector<8x128xi1>, vector<8x128xf32>
    %cst_12 = arith.constant dense<0xFF800000> : vector<8xf32>
    %19 = vector.multi_reduction <maximumf>, %18, %cst_12 [1] : vector<8x128xf32> to vector<8xf32>
    %20 = vector.shape_cast %19 : vector<8xf32> to vector<8x1xf32>
    %21 = vector.broadcast %20 : vector<8x1xf32> to vector<8x128xf32>
    %22 = arith.subf %18, %21 : vector<8x128xf32>
    %23 = math.exp %22 : vector<8x128xf32>
    %cst_13 = arith.constant dense<0.000000e+00> : vector<8xf32>
    %24 = vector.multi_reduction <add>, %23, %cst_13 [1] : vector<8x128xf32> to vector<8xf32>
    %25 = vector.shape_cast %24 : vector<8xf32> to vector<8x1xf32>
    %26 = math.log %25 : vector<8x1xf32>
    %27 = vector.broadcast %26 : vector<8x1xf32> to vector<8x128xf32>
    %28 = arith.subf %22, %27 : vector<8x128xf32>
    %c0_14 = arith.constant 0 : index
    %c0_15 = arith.constant 0 : index
    %29 = vector.load %arg6[%c0_14, %c0_15] : memref<8x128xf32, #tpu.memory_space<vmem>>, vector<8x128xf32>
    tpu.vector_store %arg6[%c0_14, %c0_15], %28 {strides = array<i32>} : memref<8x128xf32, #tpu.memory_space<vmem>>, vector<8x128xf32>,
    return
  }
  func.func @transform_0(%arg0: i32) -> (i32, i32) {
    %c0_i32 = arith.constant 0 : i32
    %c0_i32_0 = arith.constant 0 : i32
    return %arg0, %c0_i32 : i32, i32
  }
  func.func @transform_1(%arg0: i32) -> (i32, i32) {
    %c0_i32 = arith.constant 0 : i32
    %c0_i32_0 = arith.constant 0 : i32
    %c0_i32_1 = arith.constant 0 : i32
    return %c0_i32, %c0_i32_0 : i32, i32
  }
  func.func @transform_2(%arg0: i32) -> (i32, i32) {
    %c0_i32 = arith.constant 0 : i32
    %c0_i32_0 = arith.constant 0 : i32
    %c0_i32_1 = arith.constant 0 : i32
    return %c0_i32, %c0_i32_0 : i32, i32
  }
  func.func @transform_3(%arg0: i32) -> (i32, i32) {
    %c0_i32 = arith.constant 0 : i32
    %c0_i32_0 = arith.constant 0 : i32
    %c0_i32_1 = arith.constant 0 : i32
    return %c0_i32, %c0_i32_0 : i32, i32
  }
  func.func @transform_4(%arg0: i32) -> (i32, i32) {
    %c0_i32 = arith.constant 0 : i32
    %c0_i32_0 = arith.constant 0 : i32
    %c0_i32_1 = arith.constant 0 : i32
    return %c0_i32, %c0_i32_0 : i32, i32
  }
  func.func @transform_5(%arg0: i32) -> (i32, i32) {
    %c0_i32 = arith.constant 0 : i32
    %c0_i32_0 = arith.constant 0 : i32
    return %arg0, %c0_i32 : i32, i32
  }
}

</mosaic_0001>

<bundles_post_ra>
// kernel: tpu_custom_call.1
= control target key start
LH: loop header
LB: loop body
LE: loop exit
PB: predicated region body
PF: predicated region fallthrough
CT: control target
= control target key end

     0   :  { %10 = vsyncpa [#allocation3], 0  ;;  %s613_s0 = inlined_call_operand.hbm [shape: bf16[8,128], index: 0, kind: input, shape index: {}]   ;;  %s614_s1 = inlined_call_operand.hbm [shape: bf16[128,128], index: 1, kind: input, shape index: {}]   ;;  %s615_s2 = inlined_call_operand.vmem [shape: f32[1,128], index: 2, kind: input, shape index: {}]   ;;  %s616_s3 = inlined_call_operand.hbm [shape: bf16[128,128], index: 3, kind: input, shape index: {}]   ;;  %s617_s4 = inlined_call_operand.vmem [shape: f32[1,128], index: 4, kind: input, shape index: {}]   ;;  %s618_s5 = inlined_call_operand.hbm [shape: f32[8,128], index: 5, kind: output, shape index: {}]  }
   0x1   :  { %11 = vsyncpa [#allocation6], 0 }
   0x2   :  { %12 = vsyncpa [#allocation4], 0  ;;  %s515_s18 = smov [#allocation5]   ;;  %s421_s22 = scalar_lea.hbm %s614_s1, 1024 }
   0x3   :  { %s28_s19 = sshll.u32 %s515_s18, 4  ;;  %p422_p0 = scmp.ne.s32.totalorder %s614_s1, %s421_s22  ;;  %s29_s19 = int_to_ptr.vmem [resolvable:$true] %s28_s19 }
   0x4   :  { %p425_p1 = scmp.lt.u32.totalorder %s421_s22, %s614_s1 }
   0x6   :  { %p427_p2 = pnand %p425_p1, %p422_p0 }
   0x8   :  { %430 = shalt.err (!%p427_p2)
}
   0x9   :  { %s431_s27 = scalar_lea.vmem %s29_s19, 1024  ;;  %p436_p4 = scmp.lt.s32.totalorder %s29_s19, %s29_s19 }
   0xa   :  { %p432_p3 = scmp.ne.s32.totalorder %s29_s19, %s431_s27  ;;  %p437_p5 = scmp.lt.s32.totalorder %s431_s27, %s431_s27 }
   0xc   :  { %p438_p6 = por %p437_p5, %p436_p4 }
   0xe   :  { %p439_p7 = pnand %p438_p6, %p432_p3 }
  0x10   :  { %442 = shalt.err (!%p439_p7)
}
  0x11   :  { %s516_s28 = smov 64   ;;  %s517_s29 = smov 4  }
  0x12   :  { %34 = dma.hbm_to_vmem [thread:$0]  %s614_s1, 1024, %s29_s19, [#allocation6], %s516_s28, %s516_s28, %s517_s29  }
  0x13   :  { %s518_s7 = smov [#allocation2]   ;;  %s519_s9 = smov [#allocation7]  }
  0x14   :  { %s19_s8 = sshll.u32 %s518_s7, 4  ;;  %s42_s10 = sshll.u32 %s519_s9, 4  ;;  %s20_s8 = int_to_ptr.vmem [resolvable:$true] %s19_s8  ;;  %s43_s10 = int_to_ptr.vmem [resolvable:$true] %s42_s10 }
  0x15   :  { %s443_s13 = scalar_lea.hbm %s613_s0, 64 }
  0x16   :  { %p444_p8 = scmp.ne.s32.totalorder %s613_s0, %s443_s13  ;;  %p447_p9 = scmp.lt.u32.totalorder %s443_s13, %s613_s0 }
  0x18   :  { %p449_p10 = pnand %p447_p9, %p444_p8 }
  0x1a   :  { %452 = shalt.err (!%p449_p10)
}
  0x1b   :  { %s453_s1 = scalar_lea.vmem %s20_s8, 64  ;;  %p458_p12 = scmp.lt.s32.totalorder %s20_s8, %s20_s8 }
  0x1c   :  { %p454_p11 = scmp.ne.s32.totalorder %s20_s8, %s453_s1  ;;  %p459_p13 = scmp.lt.s32.totalorder %s453_s1, %s453_s1 }
  0x1e   :  { %p460_p0 = por %p459_p13, %p458_p12 }
  0x20   :  { %p461_p1 = pnand %p460_p0, %p454_p11 }
  0x22   :  { %464 = shalt.err (!%p461_p1)
}
  0x23   :  { %22 = dma.hbm_to_vmem [thread:$0]  %s613_s0, 64, %s20_s8, [#allocation3]  }
  0x24   :  { %s465_s22 = scalar_lea.hbm %s616_s3, 1024 }
  0x25   :  { %p466_p2 = scmp.ne.s32.totalorder %s616_s3, %s465_s22  ;;  %p469_p3 = scmp.lt.u32.totalorder %s465_s22, %s616_s3 }
  0x27   :  { %p471_p4 = pnand %p469_p3, %p466_p2 }
  0x29   :  { %474 = shalt.err (!%p471_p4)
}
  0x2a   :  { %s475_s27 = scalar_lea.vmem %s43_s10, 1024  ;;  %p480_p6 = scmp.lt.s32.totalorder %s43_s10, %s43_s10 }
  0x2b   :  { %p476_p5 = scmp.ne.s32.totalorder %s43_s10, %s475_s27  ;;  %p481_p7 = scmp.lt.s32.totalorder %s475_s27, %s475_s27 }
  0x2d   :  { %p482_p8 = por %p481_p7, %p480_p6 }
  0x2f   :  { %p483_p9 = pnand %p482_p8, %p476_p5 }
  0x31   :  { %486 = shalt.err (!%p483_p9)
}
  0x32   :  { %48 = dma.hbm_to_vmem [thread:$0]  %s616_s3, 1024, %s43_s10, [#allocation6], %s516_s28, %s516_s28, %s517_s29  }
  0x33   :  { %509 = dma.done.wait [#allocation3], 64  }
  0x34   :  { %510 = vsyncadd [#allocation3], 4294967232 }
  0x35   :  { %511 = dma.done.wait [#allocation6], 2048  }
  0x36   :  { %512 = vsyncadd [#allocation6], 4294965248  ;;  %v520_v0 = vmov 0.0   ;;  %vm521_vm0 = vmmov 0   ;;  %v401_v1 = vld [vmem:[#allocation5] sm:$0xff]   ;;  %v402_v2 = vld [vmem:[#allocation5 + $0x8] sm:$0xff]   ;;  %v286_v26 = vlaneseq }
  0x37   :  { %353 = vmatprep.subr.bf16.mxu0 %v520_v0  ;;  %369 = vmatprep.mubr.msk.bf16.mxu0 %vm521_vm0, %v520_v0  ;;  %v403_v3 = vld [vmem:[#allocation5 + $0x10] sm:$0xff]   ;;  %v409_v4 = vld [vmem:[#allocation7] sm:$0xff]   ;;  %v404_v5 = vld [vmem:[#allocation5 + $0x18] sm:$0xff]  }
  0x38   :  { %373 = vmatprep.subr.bf16.mxu1 %v520_v0  ;;  %389 = vmatprep.mubr.msk.bf16.mxu1 %vm521_vm0, %v520_v0  ;;  %v410_v6 = vld [vmem:[#allocation7 + $0x8] sm:$0xff]   ;;  %v405_v7 = vld [vmem:[#allocation5 + $0x20] sm:$0xff]   ;;  %v411_v8 = vld [vmem:[#allocation7 + $0x10] sm:$0xff]   ;;  %v287_v27 = vand.u32 127, %v286_v26 }
  0x39   :  { %354 = vmatpush3.bf16.msra.mxu0 %v401_v1  ;;  %374 = vmatpush3.bf16.msra.mxu1 %v409_v4  ;;  %v406_v9 = vld [vmem:[#allocation5 + $0x28] sm:$0xff]   ;;  %v412_v10 = vld [vmem:[#allocation7 + $0x18] sm:$0xff]   ;;  %v407_v11 = vld [vmem:[#allocation5 + $0x30] sm:$0xff]  }
  0x3a   :  { %355 = vmatprep.subr.bf16.mxu0 %v520_v0  ;;  %375 = vmatprep.subr.bf16.mxu1 %v520_v0  ;;  %v413_v12 = vld [vmem:[#allocation7 + $0x20] sm:$0xff]   ;;  %v408_v13 = vld [vmem:[#allocation5 + $0x38] sm:$0xff]   ;;  %v414_v14 = vld [vmem:[#allocation7 + $0x28] sm:$0xff]   ;;  %vm288_vm1 = vcmp.lt.s32.totalorder %v287_v27, 64 }
  0x3b   :  { %v61_v15 = vld [vmem:[#allocation2] sm:$0xf]  ;;  %v415_v16 = vld [vmem:[#allocation7 + $0x30] sm:$0xff]  }
  0x3c   :  { %v416_v17 = vld [vmem:[#allocation7 + $0x38] sm:$0xff]  }
  0x3d   :  { %356 = vmatpush3.bf16.msra.mxu0 %v402_v2  ;;  %376 = vmatpush3.bf16.msra.mxu1 %v410_v6  ;;  %v317_v18 = vld [vmem:[%s615_s2] ss:$0 sm:$0xff]  ;;  %s522_s2 = smov [#allocation8]  }
  0x3e   :  { %357 = vmatprep.subr.bf16.mxu0 %v520_v0  ;;  %377 = vmatprep.subr.bf16.mxu1 %v520_v0  ;;  %v326_v28 = vld [vmem:[%s617_s4] ss:$0 sm:$0xff]  ;;  %s307_s7 = sshll.u32 %s522_s2, 4  ;;  %s308_s7 = int_to_ptr.vmem [resolvable:$true] %s307_s7 }
  0x3f   :  { %s487_s4 = scalar_lea.vmem %s308_s7, 128  ;;  %p492_p11 = scmp.lt.s32.totalorder %s308_s7, %s308_s7 }
  0x40   :  { %p488_p10 = scmp.ne.s32.totalorder %s308_s7, %s487_s4  ;;  %p493_p12 = scmp.lt.s32.totalorder %s487_s4, %s487_s4 }
  0x41   :  { %358 = vmatpush3.bf16.msra.mxu0 %v403_v3  ;;  %378 = vmatpush3.bf16.msra.mxu1 %v411_v8 }
  0x42   :  { %359 = vmatprep.subr.bf16.mxu0 %v520_v0  ;;  %379 = vmatprep.subr.bf16.mxu1 %v520_v0  ;;  %p494_p13 = por %p493_p12, %p492_p11 }
  0x44   :  { %p495_p0 = pnand %p494_p13, %p488_p10 }
  0x45   :  { %360 = vmatpush3.bf16.msra.mxu0 %v404_v5  ;;  %380 = vmatpush3.bf16.msra.mxu1 %v412_v10 }
  0x46   :  { %361 = vmatprep.subr.bf16.mxu0 %v520_v0  ;;  %381 = vmatprep.subr.bf16.mxu1 %v520_v0 }
  0x49   :  { %362 = vmatpush3.bf16.msra.mxu0 %v405_v7  ;;  %382 = vmatpush3.bf16.msra.mxu1 %v413_v12 }
  0x4a   :  { %363 = vmatprep.subr.bf16.mxu0 %v520_v0  ;;  %383 = vmatprep.subr.bf16.mxu1 %v520_v0 }
  0x4d   :  { %364 = vmatpush3.bf16.msra.mxu0 %v406_v9  ;;  %384 = vmatpush3.bf16.msra.mxu1 %v414_v14 }
  0x4e   :  { %365 = vmatprep.subr.bf16.mxu0 %v520_v0  ;;  %385 = vmatprep.subr.bf16.mxu1 %v520_v0 }
  0x51   :  { %366 = vmatpush3.bf16.msra.mxu0 %v407_v11  ;;  %386 = vmatpush3.bf16.msra.mxu1 %v415_v16 }
  0x52   :  { %367 = vmatprep.subr.bf16.mxu0 %v520_v0  ;;  %387 = vmatprep.subr.bf16.mxu1 %v520_v0 }
  0x55   :  { %368 = vmatpush3.bf16.msra.mxu0 %v408_v13  ;;  %388 = vmatpush3.bf16.msra.mxu1 %v416_v17 }
  0x58   :  { %370 = vmatmul.mubr.bf16.vlgmr.msra.gmra.mrb[0].mxu0 %v61_v15 }
 0x12b   :  { %v167_v19 = vpop.f32.mrb[0].mxu0 }
 0x12c   :  { %v168_v20 = vadd.f32 %v317_v18, %v167_v19  ;;  %v371_v21 = vpop.f32.mrb[1].mxu0 }
 0x12d   :  { %v170_v22 = vpop.f32.mrb[2].mxu0 }
 0x12e   :  { %v173_v23 = vmax.f32 %v168_v20, 0.0  ;;  %v372_v24 = vpop.f32.mrb[3].mxu0 }
 0x130   :  { %v174_v25 = vpack.c.bf16 %v173_v23, %v173_v23 }
 0x132   :  { %390 = vmatmul.mubr.bf16.vlgmr.msra.gmra.mrb[0].mxu1 %v174_v25 }
 0x205   :  { %v280_v29 = vpop.f32.mrb[0].mxu1 }
 0x206   :  { %v281_v30 = vadd.f32 %v326_v28, %v280_v29  ;;  %v391_v31 = vpop.f32.mrb[1].mxu1 }
 0x207   :  { %v283_v32 = vpop.f32.mrb[2].mxu1 }
 0x208   :  { %v392_v33 = vpop.f32.mrb[3].mxu1  ;;  %v289_v34 = vsel %vm288_vm1, %v281_v30, -1e+30 }
 0x209   :  { %290 = vmax.xlane.f32.xlu0 %v289_v34 }
 0x296   :  { %v291_v35 = vpop.xlane.xlu0 %290 }
 0x297   :  { %v292_v36 = vsub.f32 %v289_v34, %v291_v35 }
 0x299   :  { %v293_v37 = vmul.f32 1.442695, %v292_v36 }
 0x29b   :  { %417 = vpow2.f32 %v293_v37 }
 0x2a5   :  { %v418_v38 = vpop.eup %417 }
 0x2a6   :  { %295 = vadd.xlane.f32.xlu0 %v418_v38 }
 0x333   :  { %v296_v39 = vpop.xlane.xlu0 %295 }
 0x334   :  { %419 = vlog2.f32 %v296_v39 }
 0x33e   :  { %v420_v40 = vpop.eup %419 }
 0x33f   :  { %v298_v41 = vmul.f32 0.6931472, %v420_v40 }
 0x341   :  { %v299_v42 = vsub.f32 %v292_v36, %v298_v41 }
 0x343   :  { %300 = vst [vmem:[#allocation8] sm:$0xff] %v299_v42 }
 0x344   :  { %498 = shalt.err (!%p495_p0)
}
 0x345   :  { %s499_s10 = scalar_lea.hbm %s618_s5, 128 }
 0x346   :  { %p500_p1 = scmp.ne.s32.totalorder %s618_s5, %s499_s10  ;;  %p503_p2 = scmp.lt.u32.totalorder %s499_s10, %s618_s5 }
 0x348   :  { %p505_p3 = pnand %p503_p2, %p500_p1 }
 0x34a   :  { %508 = shalt.err (!%p505_p3)
}
 0x34b   :  { %310 = dma.vmem_to_hbm [thread:$0]  %s308_s7, 128, %s618_s5, [#allocation4]  }
 0x34c   :  { %513 = dma.done.wait [#allocation4], 128  }
 0x34d   :  { %514 = vsyncadd [#allocation4], 4294967168 }
 0x34e   :  { %314 = vsyncpa [#allocation3], 1 }
 0x34f   :  { %315 = vsyncpa [#allocation6], 1 }
 0x350   :  { %316 = vsyncpa [#allocation4], 1 }

</bundles_post_ra>
